<compile_context>
chip_gen: v7x
topology: tpu7x:2x2x1
jax: 0.10.0
libtpu: 0.0.40
codegen_flags: <defaults>
</compile_context>

<pallas_src>
import numpy as np
import jax
import jax.numpy as jnp
from jax.experimental import pallas as pl
from jax.experimental.pallas import tpu as pltpu

DEFAULT_LABELS = ('-', '|', 'E', 'T', 'A', 'O', 'N', 'I', 'H', 'S', 'R', 'D',
                  'L', 'U', 'M', 'W', 'C', 'F', 'G', 'Y', 'P', 'B', 'V', 'K',
                  "'", 'X', 'J', 'Q', 'Z')
BLANK = 0

# Small synthetic model dims (the real model is 1024-hidden, 24 layers).
KERNEL_W = 10                 # conv kernel width (first wav2vec conv layer uses 10)
STRIDE = 5                    # conv stride      (first wav2vec conv layer uses 5)
HIDDEN = 32                   # hidden / feature channels
VOCAB = len(DEFAULT_LABELS)   # 29 real labels
LANES = 128                   # lane-dense activation / padded-label width
FRAMES = 64                   # number of output frames
T = KERNEL_W + (FRAMES - 1) * STRIDE   # waveform length -> exactly FRAMES frames
KP = 16                       # padded conv contraction: 10 taps + 1 bias col + 5 zeros
NEG_FILL = -1e30              # bias fill for padded label columns (never wins argmax)

assert KERNEL_W == 2 * STRIDE          # enables the reshape+shift patch formulation
assert T == (FRAMES + 1) * STRIDE

# Parameter-blob row layout (all segments start on 16-row boundaries so the
# static in-kernel slices stay aligned to bf16 (16, 128) tiles).
ROW_WC = 0                    # rows [  0,  16): conv weight (10 taps) + bias row (tap 10)
ROW_WE = ROW_WC + KP          # rows [ 16, 144): encoder weight (128, 128)
ROW_BE = ROW_WE + LANES       # rows [144, 160): encoder bias in row 144
ROW_WO = ROW_BE + 16          # rows [160, 288): head weight (128, 128)
ROW_BO = ROW_WO + LANES       # rows [288, 304): head bias in row 288
BLOB_ROWS = ROW_BO + 16       # 304 rows x 128 lanes, bf16 (~78 KB)


def _wav2vec_kernel(patches_ref, params_ref, emission_ref):
    # patches_ref : (FRAMES, KP) bf16; cols 0..9 = conv taps, col 10 = 1.0
    #               (folded conv bias), cols 11..15 = 0.
    # params_ref  : (BLOB_ROWS, LANES) bf16 packed parameter blob.
    # emission_ref: (FRAMES, LANES) f32 lane-dense emissions (cols >= VOCAB ~ -1e30).
    wc = params_ref[ROW_WC:ROW_WC + KP, :]          # (KP, 128)   conv weight + bias row
    we = params_ref[ROW_WE:ROW_WE + LANES, :]       # (128, 128)  encoder weight
    be = params_ref[ROW_BE:ROW_BE + 1, :]           # (1, 128)    encoder bias
    wo = params_ref[ROW_WO:ROW_WO + LANES, :]       # (128, 128)  head weight
    bo = params_ref[ROW_BO:ROW_BO + 1, :]           # (1, 128)    head bias (-1e30 padded)

    # Conv1d(K=10, stride=5) + bias as a single MXU matmul (bias folded via the
    # constant-1 patch column).  Padded lanes have zero weight -> stay exactly 0.
    h = jnp.dot(patches_ref[...], wc, preferred_element_type=jnp.float32)
    # TODO(synk): torch nn.GELU defaults to the exact erf form; the tanh
    # approximation is used so the transcendental lowers on every TPU
    # generation.  |err| <~ 1e-3 per activation; can flip argmax only on
    # near-tie frames.  Element-wise math kept in f32 (v5e has no bf16 VPU/EUP).
    h = jax.nn.gelu(h, approximate=True)

    # Encoder (simplified to one dense layer).
    # TODO(synk): the real model's 24-layer transformer encoder is not replicated.
    h = jnp.dot(h.astype(jnp.bfloat16), we, preferred_element_type=jnp.float32)
    h = jax.nn.gelu(h + be.astype(jnp.float32), approximate=True)

    # Output head -> lane-dense per-frame emissions.  Padded label columns get
    # zero weight cols + NEG_FILL bias, so the unmasked full-lane store never
    # perturbs the argmax over the 29 real labels.
    emission_ref[...] = (
        jnp.dot(h.astype(jnp.bfloat16), wo, preferred_element_type=jnp.float32)
        + bo.astype(jnp.float32))


def _emission_padded(patches, params):
    """Single-invocation, all-in-VMEM Pallas call -> (FRAMES, LANES) f32."""
    vmem = pl.BlockSpec(memory_space=pltpu.MemorySpace.VMEM)
    flops = 2 * FRAMES * LANES * (KP + LANES + LANES)
    bytes_accessed = (FRAMES * KP * 2            # patches (bf16)
                      + BLOB_ROWS * LANES * 2    # parameter blob (bf16)
                      + FRAMES * LANES * 4)      # emissions (f32)
    return pl.pallas_call(
        _wav2vec_kernel,
        out_shape=jax.ShapeDtypeStruct((FRAMES, LANES), jnp.float32),
        in_specs=[vmem, vmem],
        out_specs=vmem,
        cost_estimate=pl.CostEstimate(
            flops=flops,
            transcendentals=2 * FRAMES * LANES,
            bytes_accessed=bytes_accessed),
    )(patches, params)


def pack_params(wc, bc, we, be, wo, bo):
    """One-time prep: fold every weight/bias into a single lane-dense bf16 blob."""
    blob = jnp.zeros((BLOB_ROWS, LANES), jnp.float32)
    blob = blob.at[ROW_WC:ROW_WC + KERNEL_W, :HIDDEN].set(wc)      # conv taps
    blob = blob.at[ROW_WC + KERNEL_W, :HIDDEN].set(bc.reshape(-1)) # conv bias row
    blob = blob.at[ROW_WE:ROW_WE + HIDDEN, :HIDDEN].set(we)        # encoder weight
    blob = blob.at[ROW_BE, :HIDDEN].set(be.reshape(-1))            # encoder bias
    blob = blob.at[ROW_WO:ROW_WO + HIDDEN, :VOCAB].set(wo)         # head weight
    blob = blob.at[ROW_BO, :].set(NEG_FILL)                        # padded-label bias
    blob = blob.at[ROW_BO, :VOCAB].set(bo.reshape(-1))             # real head bias
    return blob.astype(jnp.bfloat16)


def wav2vec_forward(waveform_1d, params):
    """waveform_1d: (T,) f32 -> (emission (FRAMES, VOCAB) f32, indices (FRAMES,) i32).

    Since KERNEL_W == 2*STRIDE the im2col is a free reshape + one-row shift:
    the (FRAMES, 10) patch matrix is two concatenated views, plus a constant-1
    bias column (augmented-matrix bias folding) and zero padding to KP.
    """
    w2 = waveform_1d.reshape(FRAMES + 1, STRIDE)
    patches = jnp.concatenate(
        [w2[:FRAMES],                                        # samples 5f + 0..4
         w2[1:],                                             # samples 5f + 5..9
         jnp.ones((FRAMES, 1), waveform_1d.dtype),           # folded conv-bias column
         jnp.zeros((FRAMES, KP - KERNEL_W - 1), waveform_1d.dtype)],
        axis=1).astype(jnp.bfloat16)

    emission_p = _emission_padded(patches, params)
    # torch.argmax(emission[0], dim=-1); padded columns are ~-1e30 so the
    # argmax over the lane-padded logits equals the argmax over the 29 labels.
    indices = jnp.argmax(emission_p, axis=-1).astype(jnp.int32)
    return emission_p[:, :VOCAB], indices


def greedy_ctc_decode(indices, labels=DEFAULT_LABELS, blank=BLANK):
    """torch.unique_consecutive + blank removal + label join (host-side glue)."""
    idx = np.asarray(indices).reshape(-1)
    if idx.size == 0:
        return ""
    keep = np.concatenate([[True], idx[1:] != idx[:-1]])
    dedup = idx[keep]
    return ''.join(labels[int(i)] for i in dedup if int(i) != blank)


if __name__ == "__main__":
    key = jax.random.PRNGKey(0)
    k_wav, k_wc, k_bc, k_we, k_be, k_wo, k_bo = jax.random.split(key, 7)

    # TODO(synk): torchaudio.load of a speech file has no Pallas equivalent;
    # use a deterministic synthetic waveform instead.
    waveform = jax.random.normal(k_wav, (1, T), dtype=jnp.float32)  # (B=1, T)

    # Deterministic parameters.
    wc = 0.3 * jax.random.normal(k_wc, (KERNEL_W, HIDDEN), jnp.float32)
    bc = 0.1 * jax.random.normal(k_bc, (HIDDEN,), jnp.float32)
    we = 0.3 * jax.random.normal(k_we, (HIDDEN, HIDDEN), jnp.float32)
    be = 0.1 * jax.random.normal(k_be, (HIDDEN,), jnp.float32)
    wo = 0.3 * jax.random.normal(k_wo, (HIDDEN, VOCAB), jnp.float32)
    bo = 0.1 * jax.random.normal(k_bo, (VOCAB,), jnp.float32)

    # One-time parameter prep: single packed lane-dense bf16 blob.
    # TODO(synk): if run per-utterance in a loop, batch utterances into one
    # pallas_call (grid over batch) so this blob is not re-DMAed every call.
    params = pack_params(wc, bc, we, be, wo, bo)

    fwd = jax.jit(wav2vec_forward)
    emission, indices = fwd(waveform[0], params)
    emission, indices = jax.block_until_ready((emission, indices))

    # Sanity check: wrapper argmax over the padded logits must match argmax of
    # the real 29-label emission.
    ref_idx = np.argmax(np.asarray(emission), axis=-1)
    assert np.array_equal(ref_idx, np.asarray(indices).reshape(-1))
    assert emission.shape == (FRAMES, VOCAB)

    transcript = greedy_ctc_decode(indices)
    assert isinstance(transcript, str)
    print("KERNEL_OK")
</pallas_src>

<mosaic_0001>
module attributes {stable_mosaic.version = 11 : i64} {
  func.func @_wav2vec_kernel(%arg0: memref<64x16xbf16, #tpu.memory_space<vmem>>, %arg1: memref<304x128xbf16, #tpu.memory_space<vmem>>, %arg2: memref<64x128xf32, #tpu.memory_space<vmem>>) attributes {dimension_semantics = [], scalar_prefetch = 0 : i64, scratch_operands = 0 : i64, tpu.core_type = #tpu.core_type<tc>} {
    %c0 = arith.constant 0 : index
    %c0_0 = arith.constant 0 : index
    %0 = vector.load %arg1[%c0, %c0_0] : memref<304x128xbf16, #tpu.memory_space<vmem>>, vector<16x128xbf16>
    %c16 = arith.constant 16 : index
    %c0_1 = arith.constant 0 : index
    %1 = vector.load %arg1[%c16, %c0_1] : memref<304x128xbf16, #tpu.memory_space<vmem>>, vector<128x128xbf16>
    %c144 = arith.constant 144 : index
    %c0_2 = arith.constant 0 : index
    %2 = vector.load %arg1[%c144, %c0_2] : memref<304x128xbf16, #tpu.memory_space<vmem>>, vector<1x128xbf16>
    %c160 = arith.constant 160 : index
    %c0_3 = arith.constant 0 : index
    %3 = vector.load %arg1[%c160, %c0_3] : memref<304x128xbf16, #tpu.memory_space<vmem>>, vector<128x128xbf16>
    %c288 = arith.constant 288 : index
    %c0_4 = arith.constant 0 : index
    %4 = vector.load %arg1[%c288, %c0_4] : memref<304x128xbf16, #tpu.memory_space<vmem>>, vector<1x128xbf16>
    %c0_5 = arith.constant 0 : index
    %c0_6 = arith.constant 0 : index
    %5 = vector.load %arg0[%c0_5, %c0_6] : memref<64x16xbf16, #tpu.memory_space<vmem>>, vector<64x16xbf16>
    %cst = arith.constant dense<0.000000e+00> : vector<64x128xf32>
    %6 = tpu.matmul %5, %0, %cst {dimension_numbers = #tpu.dot_dimension_numbers<[1], [0], [0], [1], [0, 0, 1, 1], [], []>} : vector<64x16xbf16>, vector<16x128xbf16>, vector<64x128xf32> -> vector<64x128xf32>
    %7 = arith.mulf %6, %6 : vector<64x128xf32>
    %8 = arith.mulf %6, %7 : vector<64x128xf32>
    %cst_7 = arith.constant 4.471500e-02 : f32
    %9 = vector.broadcast %cst_7 : f32 to vector<64x128xf32>
    %10 = arith.mulf %9, %8 : vector<64x128xf32>
    %11 = arith.addf %6, %10 : vector<64x128xf32>
    %cst_8 = arith.constant 0.797884583 : f32
    %12 = vector.broadcast %cst_8 : f32 to vector<64x128xf32>
    %13 = arith.mulf %12, %11 : vector<64x128xf32>
    %14 = math.tanh %13 : vector<64x128xf32>
    %cst_9 = arith.constant 1.000000e+00 : f32
    %15 = vector.broadcast %cst_9 : f32 to vector<64x128xf32>
    %16 = arith.addf %15, %14 : vector<64x128xf32>
    %cst_10 = arith.constant 5.000000e-01 : f32
    %17 = vector.broadcast %cst_10 : f32 to vector<64x128xf32>
    %18 = arith.mulf %17, %16 : vector<64x128xf32>
    %19 = arith.mulf %6, %18 : vector<64x128xf32>
    %20 = arith.truncf %19 : vector<64x128xf32> to vector<64x128xbf16>
    %cst_11 = arith.constant dense<0.000000e+00> : vector<64x128xf32>
    %21 = tpu.matmul %20, %1, %cst_11 {dimension_numbers = #tpu.dot_dimension_numbers<[1], [0], [0], [1], [0, 0, 1, 1], [], []>} : vector<64x128xbf16>, vector<128x128xbf16>, vector<64x128xf32> -> vector<64x128xf32>
    %22 = arith.extf %2 : vector<1x128xbf16> to vector<1x128xf32>
    %23 = vector.broadcast %22 : vector<1x128xf32> to vector<64x128xf32>
    %24 = arith.addf %21, %23 : vector<64x128xf32>
    %25 = arith.mulf %24, %24 : vector<64x128xf32>
    %26 = arith.mulf %24, %25 : vector<64x128xf32>
    %cst_12 = arith.constant 4.471500e-02 : f32
    %27 = vector.broadcast %cst_12 : f32 to vector<64x128xf32>
    %28 = arith.mulf %27, %26 : vector<64x128xf32>
    %29 = arith.addf %24, %28 : vector<64x128xf32>
    %cst_13 = arith.constant 0.797884583 : f32
    %30 = vector.broadcast %cst_13 : f32 to vector<64x128xf32>
    %31 = arith.mulf %30, %29 : vector<64x128xf32>
    %32 = math.tanh %31 : vector<64x128xf32>
    %cst_14 = arith.constant 1.000000e+00 : f32
    %33 = vector.broadcast %cst_14 : f32 to vector<64x128xf32>
    %34 = arith.addf %33, %32 : vector<64x128xf32>
    %cst_15 = arith.constant 5.000000e-01 : f32
    %35 = vector.broadcast %cst_15 : f32 to vector<64x128xf32>
    %36 = arith.mulf %35, %34 : vector<64x128xf32>
    %37 = arith.mulf %24, %36 : vector<64x128xf32>
    %38 = arith.truncf %37 : vector<64x128xf32> to vector<64x128xbf16>
    %cst_16 = arith.constant dense<0.000000e+00> : vector<64x128xf32>
    %39 = tpu.matmul %38, %3, %cst_16 {dimension_numbers = #tpu.dot_dimension_numbers<[1], [0], [0], [1], [0, 0, 1, 1], [], []>} : vector<64x128xbf16>, vector<128x128xbf16>, vector<64x128xf32> -> vector<64x128xf32>
    %40 = arith.extf %4 : vector<1x128xbf16> to vector<1x128xf32>
    %41 = vector.broadcast %40 : vector<1x128xf32> to vector<64x128xf32>
    %42 = arith.addf %39, %41 : vector<64x128xf32>
    %c0_17 = arith.constant 0 : index
    %c0_18 = arith.constant 0 : index
    %43 = vector.load %arg2[%c0_17, %c0_18] : memref<64x128xf32, #tpu.memory_space<vmem>>, vector<64x128xf32>
    tpu.vector_store %arg2[%c0_17, %c0_18], %42 {strides = array<i32>} : memref<64x128xf32, #tpu.memory_space<vmem>>, vector<64x128xf32>,
    return
  }
}

</mosaic_0001>

<bundles_post_ra>
// kernel: wav2vec_forward.1
= control target key start
LH: loop header
LB: loop body
LE: loop exit
PB: predicated region body
PF: predicated region fallthrough
CT: control target
= control target key end

     0   :  { %vm82_vm0 = vcmask 130048   ;;  %s945_s1 = inlined_call_operand.vmem [shape: bf16[304,128], index: 1, kind: input, shape index: {}]   ;;  %s946_s0 = inlined_call_operand.vmem [shape: bf16[64,16], index: 0, kind: input, shape index: {}]   ;;  %s947_s2 = inlined_call_operand.vmem [shape: f32[64,128], index: 2, kind: output, shape index: {}]  }
   0x1   :  { %v672_v0 = vld [vmem:[%s945_s1] sm:$0xff]   ;;  %v674_v2 = vld [vmem:[%s946_s0 + $0x8] sm:$0xff]   ;;  %v675_v3 = vld [vmem:[%s946_s0 + $0x10] sm:$0xff]  }
   0x2   :  { %v673_v1 = vld [vmem:[%s946_s0] sm:$0xff]   ;;  %614 = vmatprep.subr.bf16.mxu0 %v672_v0  ;;  %v676_v4 = vld [vmem:[%s946_s0 + $0x18] sm:$0xff]   ;;  %v677_v5 = vld [vmem:[%s945_s1 + $0x8] sm:$0xff]  }
   0x3   :  { %615 = vmatpush3.bf16.msra.mxu0 %v672_v0  ;;  %616 = vmatprep.mubr.msk.bf16.mxu0 %vm82_vm0, %v673_v1  ;;  %v678_v6 = vld [vmem:[%s945_s1 + $0x10] sm:$0xff]   ;;  %v679_v7 = vld [vmem:[%s945_s1 + $0x18] sm:$0xff]   ;;  %v680_v8 = vld [vmem:[%s945_s1 + $0x20] sm:$0xff]  }
   0x4   :  { %624 = vmatprep.subr.bf16.mxu1 %v677_v5  ;;  %v681_v9 = vld [vmem:[%s945_s1 + $0x28] sm:$0xff]   ;;  %v682_v10 = vld [vmem:[%s945_s1 + $0x30] sm:$0xff]   ;;  %v683_v11 = vld [vmem:[%s945_s1 + $0x38] sm:$0xff]  }
   0x5   :  { %625 = vmatpush3.bf16.msra.mxu1 %v677_v5  ;;  %v684_v12 = vld [vmem:[%s945_s1 + $0x40] sm:$0xff]  }
   0x6   :  { %617 = vmatmul.mubr.msk.bf16.vlgmr.msra.gmra.mrb[0].mxu0 %vm82_vm0, %v674_v2  ;;  %626 = vmatprep.subr.bf16.mxu1 %v678_v6 }
   0x7   :  { %620 = vmatprep.mubr.msk.bf16.mxu0 %vm82_vm0, %v675_v3 }
   0x9   :  { %627 = vmatpush3.bf16.msra.mxu1 %v678_v6 }
   0xa   :  { %628 = vmatprep.subr.bf16.mxu1 %v679_v7 }
   0xd   :  { %629 = vmatpush3.bf16.msra.mxu1 %v679_v7 }
   0xe   :  { %621 = vmatmul.mubr.msk.bf16.gmra.mrb[4].mxu0 %vm82_vm0, %v676_v4  ;;  %630 = vmatprep.subr.bf16.mxu1 %v680_v8 }
  0x11   :  { %631 = vmatpush3.bf16.msra.mxu1 %v680_v8 }
  0x12   :  { %632 = vmatprep.subr.bf16.mxu1 %v681_v9 }
  0x15   :  { %633 = vmatpush3.bf16.msra.mxu1 %v681_v9 }
  0x16   :  { %634 = vmatprep.subr.bf16.mxu1 %v682_v10 }
  0x19   :  { %635 = vmatpush3.bf16.msra.mxu1 %v682_v10 }
  0x1a   :  { %636 = vmatprep.subr.bf16.mxu1 %v683_v11 }
  0x1d   :  { %637 = vmatpush3.bf16.msra.mxu1 %v683_v11 }
  0x1e   :  { %638 = vmatprep.subr.bf16.mxu1 %v684_v12 }
  0x21   :  { %639 = vmatpush3.bf16.msra.mxu1 %v684_v12 }
  0xd9   :  { %v779_v13 = vpop.f32.mrb[0].mxu0 }
  0xda   :  { %v162_v14 = vmul.f32 %v779_v13, %v779_v13  ;;  %v783_v15 = vpop.f32.mrb[1].mxu0 }
  0xdb   :  { %v160_v16 = vmul.f32 %v783_v15, %v783_v15  ;;  %v787_v17 = vpop.f32.mrb[2].mxu0 }
  0xdc   :  { %v170_v18 = vmul.f32 %v779_v13, %v162_v14  ;;  %v163_v19 = vmul.f32 %v787_v17, %v787_v17  ;;  %v792_v20 = vpop.f32.mrb[3].mxu0 }
  0xdd   :  { %v168_v21 = vmul.f32 %v160_v16, %v783_v15  ;;  %v161_v22 = vmul.f32 %v792_v20, %v792_v20 }
  0xde   :  { %v178_v23 = vmul.f32 0.044715, %v170_v18  ;;  %v171_v24 = vmul.f32 %v787_v17, %v163_v19 }
  0xdf   :  { %v176_v25 = vmul.f32 0.044715, %v168_v21  ;;  %v169_v26 = vmul.f32 %v161_v22, %v792_v20 }
  0xe0   :  { %v186_v27 = vadd.f32 %v779_v13, %v178_v23  ;;  %v179_v28 = vmul.f32 0.044715, %v171_v24 }
  0xe1   :  { %v184_v29 = vadd.f32 %v176_v25, %v783_v15  ;;  %v177_v30 = vmul.f32 0.044715, %v169_v26  ;;  %v801_v31 = vpop.f32.mrb[4].mxu0 }
  0xe2   :  { %v194_v32 = vmul.f32 0.7978846, %v186_v27  ;;  %v187_v33 = vadd.f32 %v787_v17, %v179_v28  ;;  %v166_v34 = vmul.f32 %v801_v31, %v801_v31  ;;  %v806_v35 = vpop.f32.mrb[5].mxu0 }
  0xe3   :  { %v192_v36 = vmul.f32 0.7978846, %v184_v29  ;;  %v185_v37 = vadd.f32 %v177_v30, %v792_v20  ;;  %v164_v38 = vmul.f32 %v806_v35, %v806_v35  ;;  %v811_v39 = vpop.f32.mrb[6].mxu0 }
  0xe4   :  { %693 = vtanh.f32 %v194_v32  ;;  %v195_v40 = vmul.f32 0.7978846, %v187_v33  ;;  %v174_v41 = vmul.f32 %v801_v31, %v166_v34  ;;  %v167_v42 = vmul.f32 %v811_v39, %v811_v39  ;;  %v148_v43 = vpop.f32.mrb[7].mxu0  ;;  %v685_v34 = vld [vmem:[%s945_s1 + $0x50] sm:$0xff]  }
  0xe5   :  { %695 = vtanh.f32 %v192_v36  ;;  %v193_v44 = vmul.f32 0.7978846, %v185_v37  ;;  %v172_v45 = vmul.f32 %v164_v38, %v806_v35  ;;  %v165_v46 = vmul.f32 %v148_v43, %v148_v43  ;;  %648 = vmatprep.subr.bf16.mxu0 %v685_v34  ;;  %v686_v36 = vld [vmem:[%s945_s1 + $0x58] sm:$0xff]   ;;  %v689_v37 = vld [vmem:[%s945_s1 + $0x70] sm:$0xff]  }
  0xe6   :  { %697 = vtanh.f32 %v195_v40  ;;  %v182_v47 = vmul.f32 0.044715, %v174_v41  ;;  %v175_v48 = vmul.f32 %v811_v39, %v167_v42  ;;  %649 = vmatpush3.bf16.msra.mxu0 %v685_v34  ;;  %v690_v38 = vld [vmem:[%s945_s1 + $0x78] sm:$0xff]   ;;  %v692_v40 = vld [vmem:[%s945_s1 + $0x88] sm:$0xff]   ;;  %v237_v41 = vlaneseq }
  0xe7   :  { %699 = vtanh.f32 %v193_v44  ;;  %v180_v49 = vmul.f32 0.044715, %v172_v45  ;;  %v173_v50 = vmul.f32 %v165_v46, %v148_v43  ;;  %650 = vmatprep.subr.bf16.mxu0 %v686_v36 }
  0xe8   :  { %v190_v51 = vadd.f32 %v801_v31, %v182_v47  ;;  %v183_v52 = vmul.f32 0.044715, %v175_v48  ;;  %v852_v42 = vshrl.u32 %v237_v41, 7 }
  0xe9   :  { %v188_v53 = vadd.f32 %v180_v49, %v806_v35  ;;  %v181_v54 = vmul.f32 0.044715, %v173_v50 }
  0xea   :  { %v198_v55 = vmul.f32 0.7978846, %v190_v51  ;;  %v191_v56 = vadd.f32 %v811_v39, %v183_v52  ;;  %651 = vmatpush3.bf16.msra.mxu0 %v686_v36  ;;  %v239_v45 = vsub.s32 0, %v852_v42 }
  0xeb   :  { %v196_v57 = vmul.f32 0.7978846, %v188_v53  ;;  %v189_v58 = vadd.f32 %v181_v54, %v148_v43 }
  0xec   :  { %701 = vtanh.f32 %v198_v55  ;;  %v199_v59 = vmul.f32 0.7978846, %v191_v56 }
  0xed   :  { %703 = vtanh.f32 %v196_v57  ;;  %v197_v60 = vmul.f32 0.7978846, %v189_v58 }
  0xee   :  { %v694_v61 = vpop.eup %693  ;;  %705 = vtanh.f32 %v199_v59 }
  0xef   :  { %v696_v62 = vpop.eup %695  ;;  %v210_v63 = vadd.f32 1.0, %v694_v61  ;;  %707 = vtanh.f32 %v197_v60 }
  0xf0   :  { %v698_v0 = vpop.eup %697  ;;  %v208_v1 = vadd.f32 1.0, %v696_v62 }
  0xf1   :  { %v700_v2 = vpop.eup %699  ;;  %v218_v3 = vmul.f32 0.5, %v210_v63  ;;  %v211_v4 = vadd.f32 1.0, %v698_v0 }
  0xf2   :  { %v209_v5 = vadd.f32 1.0, %v700_v2  ;;  %v216_v6 = vmul.f32 0.5, %v208_v1 }
  0xf3   :  { %v219_v7 = vmul.f32 0.5, %v211_v4  ;;  %v226_v9 = vmul.f32 %v779_v13, %v218_v3 }
  0xf4   :  { %v217_v8 = vmul.f32 0.5, %v209_v5  ;;  %v224_v12 = vmul.f32 %v216_v6, %v783_v15 }
  0xf5   :  { %v227_v10 = vmul.f32 %v787_v17, %v219_v7 }
  0xf6   :  { %v702_v11 = vpop.eup %701  ;;  %v225_v14 = vmul.f32 %v217_v8, %v792_v20 }
  0xf7   :  { %v704_v16 = vpop.eup %703  ;;  %v214_v18 = vadd.f32 1.0, %v702_v11  ;;  %v233_v19 = vpack.c.bf16 %v227_v10, %v226_v9 }
  0xf8   :  { %v706_v21 = vpop.eup %705  ;;  %v212_v22 = vadd.f32 1.0, %v704_v16  ;;  %v232_v23 = vpack.c.bf16 %v225_v14, %v224_v12 }
  0xf9   :  { %v708_v24 = vpop.eup %707  ;;  %v222_v25 = vmul.f32 0.5, %v214_v18  ;;  %v215_v26 = vadd.f32 1.0, %v706_v21 }
  0xfa   :  { %v220_v27 = vmul.f32 0.5, %v212_v22  ;;  %v213_v28 = vadd.f32 1.0, %v708_v24  ;;  %640 = vmatprep.mubr.bf16.mxu1 %v232_v23 }
  0xfb   :  { %v223_v13 = vmul.f32 0.5, %v215_v26  ;;  %641 = vmatmul.mubr.bf16.vlgmr.msra.gmra.mrb[0].mxu1 %v233_v19  ;;  %v230_v29 = vmul.f32 %v801_v31, %v222_v25  ;;  %v687_v31 = vld [vmem:[%s945_s1 + $0x60] sm:$0xff]  }
  0xfc   :  { %v221_v17 = vmul.f32 0.5, %v213_v28  ;;  %v228_v20 = vmul.f32 %v220_v27, %v806_v35  ;;  %652 = vmatprep.subr.bf16.mxu0 %v687_v31  ;;  %v688_v35 = vld [vmem:[%s945_s1 + $0x68] sm:$0xff]  }
  0xfd   :  { %v231_v15 = vmul.f32 %v811_v39, %v223_v13  ;;  %653 = vmatpush3.bf16.msra.mxu0 %v687_v31  ;;  %v691_v39 = vld [vmem:[%s945_s1 + $0x80] sm:$0xff]  }
  0xfe   :  { %v229_v30 = vmul.f32 %v221_v17, %v148_v43  ;;  %654 = vmatprep.subr.bf16.mxu0 %v688_v35  ;;  %v30_v43 = vld [vmem:[%s945_s1 + $0x48] sm:$0x1] }
  0xff   :  { %v235_v32 = vpack.c.bf16 %v231_v15, %v230_v29  ;;  %v236_v44 = vunpack.c.l.bf16 %v30_v43 }
 0x100   :  { %v234_v33 = vpack.c.bf16 %v229_v30, %v228_v20 }
 0x101   :  { %655 = vmatpush3.bf16.msra.mxu0 %v688_v35  ;;  %v240_v46 = vrot.slane %v236_v44, %v239_v45 }
 0x102   :  { %644 = vmatprep.mubr.bf16.mxu1 %v234_v33  ;;  %656 = vmatprep.subr.bf16.mxu0 %v689_v37 }
 0x103   :  { %645 = vmatmul.mubr.bf16.gmra.mrb[4].mxu1 %v235_v32 }
 0x105   :  { %657 = vmatpush3.bf16.msra.mxu0 %v689_v37 }
 0x106   :  { %658 = vmatprep.subr.bf16.mxu0 %v690_v38 }
 0x109   :  { %659 = vmatpush3.bf16.msra.mxu0 %v690_v38 }
 0x10a   :  { %660 = vmatprep.subr.bf16.mxu0 %v691_v39 }
 0x10d   :  { %661 = vmatpush3.bf16.msra.mxu0 %v691_v39 }
 0x10e   :  { %662 = vmatprep.subr.bf16.mxu0 %v692_v40 }
 0x111   :  { %663 = vmatpush3.bf16.msra.mxu0 %v692_v40 }
 0x1ce   :  { %v642_v47 = vpop.f32.mrb[0].mxu1 }
 0x1cf   :  { %v860_v48 = vadd.f32 %v642_v47, %v240_v46  ;;  %v323_v49 = vpop.f32.mrb[1].mxu1 }
 0x1d0   :  { %v862_v50 = vadd.f32 %v323_v49, %v240_v46  ;;  %v643_v51 = vpop.f32.mrb[2].mxu1 }
 0x1d1   :  { %v356_v52 = vmul.f32 %v860_v48, %v860_v48  ;;  %v866_v53 = vadd.f32 %v643_v51, %v240_v46  ;;  %v326_v54 = vpop.f32.mrb[3].mxu1 }
 0x1d2   :  { %v354_v55 = vmul.f32 %v862_v50, %v862_v50  ;;  %v870_v56 = vadd.f32 %v326_v54, %v240_v46 }
 0x1d3   :  { %v364_v57 = vmul.f32 %v356_v52, %v860_v48  ;;  %v357_v58 = vmul.f32 %v866_v53, %v866_v53 }
 0x1d4   :  { %v362_v59 = vmul.f32 %v354_v55, %v862_v50  ;;  %v355_v60 = vmul.f32 %v870_v56, %v870_v56 }
 0x1d5   :  { %v372_v61 = vmul.f32 0.044715, %v364_v57  ;;  %v365_v62 = vmul.f32 %v357_v58, %v866_v53 }
 0x1d6   :  { %v370_v63 = vmul.f32 0.044715, %v362_v59  ;;  %v363_v0 = vmul.f32 %v355_v60, %v870_v56  ;;  %v646_v1 = vpop.f32.mrb[4].mxu1 }
 0x1d7   :  { %v380_v2 = vadd.f32 %v372_v61, %v860_v48  ;;  %v373_v3 = vmul.f32 0.044715, %v365_v62  ;;  %v881_v4 = vadd.f32 %v646_v1, %v240_v46  ;;  %v339_v5 = vpop.f32.mrb[5].mxu1 }
 0x1d8   :  { %v378_v6 = vadd.f32 %v370_v63, %v862_v50  ;;  %v371_v7 = vmul.f32 0.044715, %v363_v0  ;;  %v884_v8 = vadd.f32 %v339_v5, %v240_v46  ;;  %v647_v9 = vpop.f32.mrb[6].mxu1 }
 0x1d9   :  { %v388_v10 = vmul.f32 0.7978846, %v380_v2  ;;  %v381_v11 = vadd.f32 %v373_v3, %v866_v53  ;;  %v360_v12 = vmul.f32 %v881_v4, %v881_v4  ;;  %v889_v14 = vadd.f32 %v647_v9, %v240_v46  ;;  %v342_v16 = vpop.f32.mrb[7].mxu1 }
 0x1da   :  { %v386_v18 = vmul.f32 0.7978846, %v378_v6  ;;  %v379_v19 = vadd.f32 %v371_v7, %v870_v56  ;;  %v358_v21 = vmul.f32 %v884_v8, %v884_v8  ;;  %v894_v22 = vadd.f32 %v342_v16, %v240_v46 }
 0x1db   :  { %709 = vtanh.f32 %v388_v10  ;;  %v389_v23 = vmul.f32 0.7978846, %v381_v11  ;;  %v368_v24 = vmul.f32 %v360_v12, %v881_v4  ;;  %v361_v25 = vmul.f32 %v889_v14, %v889_v14 }
 0x1dc   :  { %711 = vtanh.f32 %v386_v18  ;;  %v387_v26 = vmul.f32 0.7978846, %v379_v19  ;;  %v366_v27 = vmul.f32 %v358_v21, %v884_v8  ;;  %v359_v28 = vmul.f32 %v894_v22, %v894_v22  ;;  %v47_v19 = vld [vmem:[%s945_s1 + $0x90] sm:$0x1] }
 0x1dd   :  { %713 = vtanh.f32 %v389_v23  ;;  %v376_v13 = vmul.f32 0.044715, %v368_v24  ;;  %v369_v17 = vmul.f32 %v361_v25, %v889_v14  ;;  %v430_v21 = vunpack.c.l.bf16 %v47_v19 }
 0x1de   :  { %715 = vtanh.f32 %v387_v26  ;;  %v374_v29 = vmul.f32 0.044715, %v366_v27  ;;  %v367_v15 = vmul.f32 %v359_v28, %v894_v22 }
 0x1df   :  { %v384_v20 = vadd.f32 %v376_v13, %v881_v4  ;;  %v377_v30 = vmul.f32 0.044715, %v369_v17  ;;  %v434_v23 = vrot.slane %v430_v21, %v239_v45 }
 0x1e0   :  { %v382_v32 = vadd.f32 %v374_v29, %v884_v8  ;;  %v375_v33 = vmul.f32 0.044715, %v367_v15 }
 0x1e1   :  { %v392_v34 = vmul.f32 0.7978846, %v384_v20  ;;  %v385_v36 = vadd.f32 %v377_v30, %v889_v14 }
 0x1e2   :  { %v390_v31 = vmul.f32 0.7978846, %v382_v32  ;;  %v383_v35 = vadd.f32 %v375_v33, %v894_v22 }
 0x1e3   :  { %717 = vtanh.f32 %v392_v34  ;;  %v393_v37 = vmul.f32 0.7978846, %v385_v36 }
 0x1e4   :  { %719 = vtanh.f32 %v390_v31  ;;  %v391_v38 = vmul.f32 0.7978846, %v383_v35 }
 0x1e5   :  { %v710_v39 = vpop.eup %709  ;;  %721 = vtanh.f32 %v393_v37 }
 0x1e6   :  { %v712_v40 = vpop.eup %711  ;;  %v404_v41 = vadd.f32 1.0, %v710_v39  ;;  %723 = vtanh.f32 %v391_v38 }
 0x1e7   :  { %v714_v43 = vpop.eup %713  ;;  %v402_v44 = vadd.f32 1.0, %v712_v40 }
 0x1e8   :  { %v716_v46 = vpop.eup %715  ;;  %v412_v47 = vmul.f32 0.5, %v404_v41  ;;  %v405_v49 = vadd.f32 1.0, %v714_v43 }
 0x1e9   :  { %v403_v51 = vadd.f32 1.0, %v716_v46  ;;  %v410_v52 = vmul.f32 0.5, %v402_v44 }
 0x1ea   :  { %v413_v54 = vmul.f32 0.5, %v405_v49  ;;  %v420_v57 = vmul.f32 %v412_v47, %v860_v48 }
 0x1eb   :  { %v411_v55 = vmul.f32 0.5, %v403_v51  ;;  %v418_v60 = vmul.f32 %v410_v52, %v862_v50 }
 0x1ec   :  { %v421_v58 = vmul.f32 %v413_v54, %v866_v53 }
 0x1ed   :  { %v718_v59 = vpop.eup %717  ;;  %v419_v61 = vmul.f32 %v411_v55, %v870_v56 }
 0x1ee   :  { %v720_v62 = vpop.eup %719  ;;  %v427_v63 = vpack.c.bf16 %v421_v58, %v420_v57  ;;  %v408_v0 = vadd.f32 1.0, %v718_v59 }
 0x1ef   :  { %v722_v1 = vpop.eup %721  ;;  %v426_v2 = vpack.c.bf16 %v419_v61, %v418_v60  ;;  %v406_v3 = vadd.f32 1.0, %v720_v62 }
 0x1f0   :  { %v724_v5 = vpop.eup %723  ;;  %v409_v6 = vadd.f32 1.0, %v722_v1  ;;  %v416_v7 = vmul.f32 0.5, %v408_v0 }
 0x1f1   :  { %664 = vmatprep.mubr.bf16.mxu0 %v426_v2  ;;  %v407_v9 = vadd.f32 1.0, %v724_v5  ;;  %v414_v10 = vmul.f32 0.5, %v406_v3 }
 0x1f2   :  { %665 = vmatmul.mubr.bf16.vlgmr.msra.gmra.mrb[8].mxu0 %v427_v63  ;;  %v417_v48 = vmul.f32 0.5, %v409_v6  ;;  %v424_v11 = vmul.f32 %v416_v7, %v881_v4 }
 0x1f3   :  { %v415_v53 = vmul.f32 0.5, %v407_v9  ;;  %v422_v56 = vmul.f32 %v414_v10, %v884_v8 }
 0x1f4   :  { %v425_v50 = vmul.f32 %v417_v48, %v889_v14 }
 0x1f5   :  { %v423_v12 = vmul.f32 %v415_v53, %v894_v22 }
 0x1f6   :  { %v429_v16 = vpack.c.bf16 %v425_v50, %v424_v11 }
 0x1f7   :  { %v428_v18 = vpack.c.bf16 %v423_v12, %v422_v56 }
 0x1f9   :  { %668 = vmatprep.mubr.bf16.mxu0 %v428_v18 }
 0x1fa   :  { %669 = vmatmul.mubr.bf16.gmra.mrb[12].mxu0 %v429_v16 }
 0x2c5   :  { %v666_v24 = vpop.f32.mrb[8].mxu0 }
 0x2c6   :  { %v526_v4 = vadd.f32 %v666_v24, %v434_v23  ;;  %v517_v25 = vpop.f32.mrb[9].mxu0 }
 0x2c7   :  { %v518_v14 = vadd.f32 %v517_v25, %v434_v23  ;;  %v667_v26 = vpop.f32.mrb[10].mxu0 }
 0x2c8   :  { %550 = vst [vmem:[%s947_s2 + $0x10] sm:$0xff] %v526_v4  ;;  %v529_v8 = vadd.f32 %v667_v26, %v434_v23  ;;  %v520_v22 = vpop.f32.mrb[11].mxu0 }
 0x2c9   :  { %548 = vst [vmem:[%s947_s2] sm:$0xff] %v518_v14  ;;  %v521_v27 = vadd.f32 %v520_v22, %v434_v23 }
 0x2ca   :  { %551 = vst [vmem:[%s947_s2 + $0x18] sm:$0xff] %v529_v8 }
 0x2cb   :  { %549 = vst [vmem:[%s947_s2 + $0x8] sm:$0xff] %v521_v27 }
 0x2cd   :  { %v670_v42 = vpop.f32.mrb[12].mxu0 }
 0x2ce   :  { %v542_v45 = vadd.f32 %v670_v42, %v434_v23  ;;  %v533_v28 = vpop.f32.mrb[13].mxu0 }
 0x2cf   :  { %v534_v13 = vadd.f32 %v533_v28, %v434_v23  ;;  %v671_v17 = vpop.f32.mrb[14].mxu0 }
 0x2d0   :  { %554 = vst [vmem:[%s947_s2 + $0x30] sm:$0xff] %v542_v45  ;;  %v545_v29 = vadd.f32 %v671_v17, %v434_v23  ;;  %v536_v15 = vpop.f32.mrb[15].mxu0 }
 0x2d1   :  { %552 = vst [vmem:[%s947_s2 + $0x20] sm:$0xff] %v534_v13  ;;  %v537_v20 = vadd.f32 %v536_v15, %v434_v23 }
 0x2d2   :  { %555 = vst [vmem:[%s947_s2 + $0x38] sm:$0xff] %v545_v29 }
 0x2d3   :  { %553 = vst [vmem:[%s947_s2 + $0x28] sm:$0xff] %v537_v20 }

</bundles_post_ra>
